<compile_context>
chip_gen: v7x
topology: tpu7x:2x2x1
jax: 0.10.0
libtpu: 0.0.40
codegen_flags: <defaults>
</compile_context>

<pallas_src>
import jax
import jax.numpy as jnp
from jax.experimental import pallas as pl
from jax.experimental.pallas import tpu as pltpu

NUM_EMBEDDINGS = 50  # nn.Embedding(50, num_pos_feats)


def _pos_embed_kernel(col_ref, row_ref, out_ref):
    """Builds the full positional-embedding slab in one invocation.

    col_ref: (F, W) float32 -- col_embed.weight[:W].T  (whole array in VMEM)
    row_ref: (F, H) float32 -- row_embed.weight[:H].T
    out_ref: (2F, H*W)      -- lane-dense slab:
        out[c,       y*W + x] = col[c, x]   for c in [0, F)
        out[F + c,   y*W + x] = row[c, y]   for c in [0, F)
    """
    f, w = col_ref.shape
    _, h = row_ref.shape
    hw = h * w

    col = col_ref[...]                                            # (F, W)
    row = row_ref[...]                                            # (F, H)

    if (128 % w == 0) and (hw % 128 == 0):
        # Fast path: build 128-lane vreg-aligned tiles and store each once.
        reps = 128 // w                       # columns repeated per 128 lanes
        n_tiles = hw // 128
        # Loop-invariant col tile, computed once (not per chunk).
        col_tile = jnp.concatenate([col] * reps, axis=-1)         # (F, 128)
        for k in range(n_tiles):
            row_tile = jnp.concatenate(
                [jnp.broadcast_to(row[:, y:y + 1], (f, w))
                 for y in range(k * reps, (k + 1) * reps)],
                axis=-1)                                          # (F, 128)
            tile = jnp.concatenate([col_tile, row_tile], axis=0)  # (2F, 128)
            out_ref[:, k * 128:(k + 1) * 128] = tile.astype(out_ref.dtype)
    else:
        # General fallback for shapes that don't tile to 128 lanes.
        col_half = jnp.concatenate([col] * h, axis=-1)            # (F, H*W)
        row_half = jnp.concatenate(
            [jnp.broadcast_to(row[:, y:y + 1], (f, w)) for y in range(h)],
            axis=-1)                                              # (F, H*W)
        out_ref[...] = jnp.concatenate(
            [col_half, row_half], axis=0).astype(out_ref.dtype)


def build_pos_embedding_slab(col_weight, row_weight, h, w, *,
                             out_dtype=jnp.float32):
    """Returns the (2*F, H, W) slab. Depends only on weights and (H, W).

    For inference with fixed weights, call this once at init and reuse it:
    the per-forward cost then reduces to a lazy batch broadcast.
    """
    assert h <= NUM_EMBEDDINGS and w <= NUM_EMBEDDINGS, (h, w)
    assert row_weight.shape == col_weight.shape
    f = col_weight.shape[1]

    # One-time tiny (<=50 x F) transforms done by XLA in the wrapper:
    # pre-slice to the used rows and pre-transpose so the kernel needs no
    # transposes or masked sublane loads.
    col_t = jnp.asarray(col_weight, jnp.float32)[:w].T            # (F, W)
    row_t = jnp.asarray(row_weight, jnp.float32)[:h].T            # (F, H)

    hw = h * w
    # TODO(synk): pass out_dtype=jnp.bfloat16 to halve HBM write bytes if the
    # downstream HAHI neck tolerates bf16 positional embeddings.
    slab = pl.pallas_call(
        _pos_embed_kernel,
        out_shape=jax.ShapeDtypeStruct((2 * f, hw), out_dtype),
        in_specs=[
            pl.BlockSpec(memory_space=pltpu.MemorySpace.VMEM),
            pl.BlockSpec(memory_space=pltpu.MemorySpace.VMEM),
        ],
        out_specs=pl.BlockSpec(memory_space=pltpu.MemorySpace.VMEM),
    )(col_t, row_t)

    # Contiguous (zero-cost) reshape to CHW: channels [0:F) = col half,
    # channels [F:2F) = row half.
    return slab.reshape(2 * f, h, w)


def position_embedding_learned(x, col_weight, row_weight, *,
                               out_dtype=jnp.float32):
    """x: (B, C, H, W). Returns pos: (B, 2*F, H, W) in out_dtype."""
    b = x.shape[0]
    h, w = x.shape[-2], x.shape[-1]
    f = col_weight.shape[1]

    slab = build_pos_embedding_slab(col_weight, row_weight, h, w,
                                    out_dtype=out_dtype)          # (2F, H, W)

    # Batch replication is a lazy broadcast; keep it inside the consumer's jit
    # so XLA fuses it into the add instead of writing B full copies to HBM.
    return jnp.broadcast_to(slab[None], (b, 2 * f, h, w))


def reference(x, col_weight, row_weight):
    """Pure-JAX reference mirroring the PyTorch forward."""
    b, _, h, w = x.shape
    x_emb = col_weight[jnp.arange(w)]          # (W, F)
    y_emb = row_weight[jnp.arange(h)]          # (H, F)
    pos = jnp.concatenate(
        [
            jnp.broadcast_to(x_emb[None, :, :], (h, w, x_emb.shape[-1])),
            jnp.broadcast_to(y_emb[:, None, :], (h, w, y_emb.shape[-1])),
        ],
        axis=-1,
    )                                           # (H, W, 2F)
    pos = jnp.transpose(pos, (2, 0, 1))[None]   # (1, 2F, H, W)
    return jnp.broadcast_to(pos, (b,) + pos.shape[1:])


if __name__ == "__main__":
    key = jax.random.PRNGKey(0)
    k_col, k_row, k_x = jax.random.split(key, 3)

    num_pos_feats = 32
    B, C, H, W = 2, 4, 16, 16

    # nn.init.uniform_ -> U[0, 1)
    col_weight = jax.random.uniform(
        k_col, (NUM_EMBEDDINGS, num_pos_feats), dtype=jnp.float32)
    row_weight = jax.random.uniform(
        k_row, (NUM_EMBEDDINGS, num_pos_feats), dtype=jnp.float32)

    x = jax.random.normal(k_x, (B, C, H, W), dtype=jnp.float32)
    mask = None  # forward ignores mask

    pos = position_embedding_learned(x, col_weight, row_weight)
    pos = jax.block_until_ready(pos)

    expected = reference(x, col_weight, row_weight)
    assert pos.shape == (B, 2 * num_pos_feats, H, W), pos.shape
    assert jnp.array_equal(pos, expected), "mismatch vs reference"

    print("KERNEL_OK")
</pallas_src>

<mosaic_0001>
module attributes {stable_mosaic.version = 11 : i64} {
  func.func @_pos_embed_kernel(%arg0: memref<32x16xf32, #tpu.memory_space<vmem>>, %arg1: memref<32x16xf32, #tpu.memory_space<vmem>>, %arg2: memref<64x256xf32, #tpu.memory_space<vmem>>) attributes {dimension_semantics = [], scalar_prefetch = 0 : i64, scratch_operands = 0 : i64, tpu.core_type = #tpu.core_type<tc>} {
    %c0 = arith.constant 0 : index
    %c0_0 = arith.constant 0 : index
    %0 = vector.load %arg0[%c0, %c0_0] : memref<32x16xf32, #tpu.memory_space<vmem>>, vector<32x16xf32>
    %c0_1 = arith.constant 0 : index
    %c0_2 = arith.constant 0 : index
    %1 = vector.load %arg1[%c0_1, %c0_2] : memref<32x16xf32, #tpu.memory_space<vmem>>, vector<32x16xf32>
    %2 = tpu.concatenate %0, %0, %0, %0, %0, %0, %0, %0 in 1 : vector<32x16xf32>, vector<32x16xf32>, vector<32x16xf32>, vector<32x16xf32>, vector<32x16xf32>, vector<32x16xf32>, vector<32x16xf32>, vector<32x16xf32> -> vector<32x128xf32>
    %3 = vector.extract_strided_slice %1 {offsets = [0, 0], sizes = [32, 1], strides = [1, 1]} : vector<32x16xf32> to vector<32x1xf32>
    %4 = vector.shape_cast %3 : vector<32x1xf32> to vector<32x1xf32>
    %5 = vector.broadcast %4 : vector<32x1xf32> to vector<32x16xf32>
    %6 = vector.extract_strided_slice %1 {offsets = [0, 1], sizes = [32, 1], strides = [1, 1]} : vector<32x16xf32> to vector<32x1xf32>
    %7 = vector.shape_cast %6 : vector<32x1xf32> to vector<32x1xf32>
    %8 = vector.broadcast %7 : vector<32x1xf32> to vector<32x16xf32>
    %9 = vector.extract_strided_slice %1 {offsets = [0, 2], sizes = [32, 1], strides = [1, 1]} : vector<32x16xf32> to vector<32x1xf32>
    %10 = vector.shape_cast %9 : vector<32x1xf32> to vector<32x1xf32>
    %11 = vector.broadcast %10 : vector<32x1xf32> to vector<32x16xf32>
    %12 = vector.extract_strided_slice %1 {offsets = [0, 3], sizes = [32, 1], strides = [1, 1]} : vector<32x16xf32> to vector<32x1xf32>
    %13 = vector.shape_cast %12 : vector<32x1xf32> to vector<32x1xf32>
    %14 = vector.broadcast %13 : vector<32x1xf32> to vector<32x16xf32>
    %15 = vector.extract_strided_slice %1 {offsets = [0, 4], sizes = [32, 1], strides = [1, 1]} : vector<32x16xf32> to vector<32x1xf32>
    %16 = vector.shape_cast %15 : vector<32x1xf32> to vector<32x1xf32>
    %17 = vector.broadcast %16 : vector<32x1xf32> to vector<32x16xf32>
    %18 = vector.extract_strided_slice %1 {offsets = [0, 5], sizes = [32, 1], strides = [1, 1]} : vector<32x16xf32> to vector<32x1xf32>
    %19 = vector.shape_cast %18 : vector<32x1xf32> to vector<32x1xf32>
    %20 = vector.broadcast %19 : vector<32x1xf32> to vector<32x16xf32>
    %21 = vector.extract_strided_slice %1 {offsets = [0, 6], sizes = [32, 1], strides = [1, 1]} : vector<32x16xf32> to vector<32x1xf32>
    %22 = vector.shape_cast %21 : vector<32x1xf32> to vector<32x1xf32>
    %23 = vector.broadcast %22 : vector<32x1xf32> to vector<32x16xf32>
    %24 = vector.extract_strided_slice %1 {offsets = [0, 7], sizes = [32, 1], strides = [1, 1]} : vector<32x16xf32> to vector<32x1xf32>
    %25 = vector.shape_cast %24 : vector<32x1xf32> to vector<32x1xf32>
    %26 = vector.broadcast %25 : vector<32x1xf32> to vector<32x16xf32>
    %27 = tpu.concatenate %5, %8, %11, %14, %17, %20, %23, %26 in 1 : vector<32x16xf32>, vector<32x16xf32>, vector<32x16xf32>, vector<32x16xf32>, vector<32x16xf32>, vector<32x16xf32>, vector<32x16xf32>, vector<32x16xf32> -> vector<32x128xf32>
    %28 = tpu.concatenate %2, %27 in 0 : vector<32x128xf32>, vector<32x128xf32> -> vector<64x128xf32>
    %c0_3 = arith.constant 0 : index
    %c0_4 = arith.constant 0 : index
    %29 = vector.load %arg2[%c0_3, %c0_4] : memref<64x256xf32, #tpu.memory_space<vmem>>, vector<64x128xf32>
    tpu.vector_store %arg2[%c0_3, %c0_4], %28 {strides = array<i32>} : memref<64x256xf32, #tpu.memory_space<vmem>>, vector<64x128xf32>,
    %30 = vector.extract_strided_slice %1 {offsets = [0, 8], sizes = [32, 1], strides = [1, 1]} : vector<32x16xf32> to vector<32x1xf32>
    %31 = vector.shape_cast %30 : vector<32x1xf32> to vector<32x1xf32>
    %32 = vector.broadcast %31 : vector<32x1xf32> to vector<32x16xf32>
    %33 = vector.extract_strided_slice %1 {offsets = [0, 9], sizes = [32, 1], strides = [1, 1]} : vector<32x16xf32> to vector<32x1xf32>
    %34 = vector.shape_cast %33 : vector<32x1xf32> to vector<32x1xf32>
    %35 = vector.broadcast %34 : vector<32x1xf32> to vector<32x16xf32>
    %36 = vector.extract_strided_slice %1 {offsets = [0, 10], sizes = [32, 1], strides = [1, 1]} : vector<32x16xf32> to vector<32x1xf32>
    %37 = vector.shape_cast %36 : vector<32x1xf32> to vector<32x1xf32>
    %38 = vector.broadcast %37 : vector<32x1xf32> to vector<32x16xf32>
    %39 = vector.extract_strided_slice %1 {offsets = [0, 11], sizes = [32, 1], strides = [1, 1]} : vector<32x16xf32> to vector<32x1xf32>
    %40 = vector.shape_cast %39 : vector<32x1xf32> to vector<32x1xf32>
    %41 = vector.broadcast %40 : vector<32x1xf32> to vector<32x16xf32>
    %42 = vector.extract_strided_slice %1 {offsets = [0, 12], sizes = [32, 1], strides = [1, 1]} : vector<32x16xf32> to vector<32x1xf32>
    %43 = vector.shape_cast %42 : vector<32x1xf32> to vector<32x1xf32>
    %44 = vector.broadcast %43 : vector<32x1xf32> to vector<32x16xf32>
    %45 = vector.extract_strided_slice %1 {offsets = [0, 13], sizes = [32, 1], strides = [1, 1]} : vector<32x16xf32> to vector<32x1xf32>
    %46 = vector.shape_cast %45 : vector<32x1xf32> to vector<32x1xf32>
    %47 = vector.broadcast %46 : vector<32x1xf32> to vector<32x16xf32>
    %48 = vector.extract_strided_slice %1 {offsets = [0, 14], sizes = [32, 1], strides = [1, 1]} : vector<32x16xf32> to vector<32x1xf32>
    %49 = vector.shape_cast %48 : vector<32x1xf32> to vector<32x1xf32>
    %50 = vector.broadcast %49 : vector<32x1xf32> to vector<32x16xf32>
    %51 = vector.extract_strided_slice %1 {offsets = [0, 15], sizes = [32, 1], strides = [1, 1]} : vector<32x16xf32> to vector<32x1xf32>
    %52 = vector.shape_cast %51 : vector<32x1xf32> to vector<32x1xf32>
    %53 = vector.broadcast %52 : vector<32x1xf32> to vector<32x16xf32>
    %54 = tpu.concatenate %32, %35, %38, %41, %44, %47, %50, %53 in 1 : vector<32x16xf32>, vector<32x16xf32>, vector<32x16xf32>, vector<32x16xf32>, vector<32x16xf32>, vector<32x16xf32>, vector<32x16xf32>, vector<32x16xf32> -> vector<32x128xf32>
    %55 = tpu.concatenate %2, %54 in 0 : vector<32x128xf32>, vector<32x128xf32> -> vector<64x128xf32>
    %c0_5 = arith.constant 0 : index
    %c128 = arith.constant 128 : index
    %56 = vector.load %arg2[%c0_5, %c128] : memref<64x256xf32, #tpu.memory_space<vmem>>, vector<64x128xf32>
    tpu.vector_store %arg2[%c0_5, %c128], %55 {strides = array<i32>} : memref<64x256xf32, #tpu.memory_space<vmem>>, vector<64x128xf32>,
    return
  }
}

</mosaic_0001>

<bundles_post_ra>
// kernel: tpu_custom_call.1
= control target key start
LH: loop header
LB: loop body
LE: loop exit
PB: predicated region body
PF: predicated region fallthrough
CT: control target
= control target key end

     0   :  { %s572_s13 = smov 16   ;;  %v573_v4 = vmov 0   ;;  %s877_s0 = inlined_call_operand.vmem [shape: f32[32,16], index: 0, kind: input, shape index: {}]   ;;  %s878_s1 = inlined_call_operand.vmem [shape: f32[32,16], index: 1, kind: input, shape index: {}]   ;;  %s879_s2 = inlined_call_operand.hbm [shape: f32[64,256], index: 2, kind: output, shape index: {}]  }
   0x1   :  { %v615_v0 = vld [vmem:[%s877_s0 + $0x10] sm:$0xff]  ;;  %v620_v1 = vld [vmem:[%s877_s0] sm:$0xff]  ;;  %v629_v2 = vld [vmem:[%s877_s0 + $0x18] sm:$0xff]  ;;  %517 = vset.pattern.permute.xlu1 %v573_v4  ;;  %516 = vset.pattern.permute.xlu0 %v573_v4 }
   0x2   :  { %28 = vrot.lane.b32.xlu1 %v615_v0, %s572_s13  ;;  %24 = vrot.lane.b32.xlu0 %v620_v1, %s572_s13  ;;  %v634_v3 = vld [vmem:[%s877_s0 + $0x8] sm:$0xff] }
   0x3   :  { %7 = vsyncpa [#allocation3], 0  ;;  %s574_s18 = smov 32   ;;  %s575_s0 = smov 48   ;;  %v667_v5 = vld [vmem:[%s878_s1 + $0x8] sm:$0xff]  ;;  %v672_v6 = vld [vmem:[%s878_s1] sm:$0xff] }
   0x4   :  { %s576_s19 = smov 64   ;;  %s577_s20 = smov 80   ;;  %v679_v7 = vld [vmem:[%s878_s1 + $0x10] sm:$0xff]  ;;  %v684_v8 = vld [vmem:[%s878_s1 + $0x18] sm:$0xff]  ;;  %v580_v9 = vmov 1   ;;  %v581_v10 = vmov 2  }
   0x5   :  { %s578_s21 = smov 96   ;;  %s579_s22 = smov 112   ;;  %v582_v11 = vmov 3   ;;  %v583_v12 = vmov 4   ;;  %v584_v13 = vmov 5   ;;  %v585_v14 = vmov 6  }
   0x6   :  { %30 = vrot.lane.b32.xlu1 %v629_v2, %s572_s13  ;;  %26 = vrot.lane.b32.xlu0 %v634_v3, %s572_s13  ;;  %v586_v15 = vmov 7   ;;  %v587_v16 = vmov 8   ;;  %v588_v21 = vmov 9   ;;  %v589_v24 = vmov 10   ;;  %s595_s1 = smov [#allocation2]  }
   0x7   :  { %v590_v31 = vmov 11   ;;  %v591_v34 = vmov 12   ;;  %vm108_vm0 = vcmask 130048   ;;  %vm113_vm1 = vcmask 261120   ;;  %s480_s3 = sshll.u32 %s595_s1, 4  ;;  %s481_s3 = int_to_ptr.vmem [resolvable:$true] %s480_s3 }
   0x8   :  { %v592_v41 = vmov 13   ;;  %vm118_vm2 = vcmask 392192   ;;  %vm123_vm3 = vcmask 523264   ;;  %v593_v45 = vmov 14   ;;  %s548_s4 = scalar_lea.vmem %s481_s3, 2048  ;;  %p553_p1 = scmp.lt.s32.totalorder %s481_s3, %s481_s3 }
   0x9   :  { %vm128_vm4 = vcmask 654336   ;;  %vm133_vm5 = vcmask 785408   ;;  %vm138_vm6 = vcmask 916480   ;;  %p549_p0 = scmp.ne.s32.totalorder %s481_s3, %s548_s4  ;;  %p554_p2 = scmp.lt.s32.totalorder %s548_s4, %s548_s4 }
   0xa   :  { %38 = vrot.lane.b32.xlu1 %v634_v3, %s574_s18  ;;  %36 = vrot.lane.b32.xlu0 %v620_v1, %s574_s18 }
   0xb   :  { %p555_p3 = por %p554_p2, %p553_p1 }
   0xd   :  { %p556_p4 = pnand %p555_p3, %p549_p0 }
   0xe   :  { %42 = vrot.lane.b32.xlu1 %v629_v2, %s574_s18  ;;  %40 = vrot.lane.b32.xlu0 %v615_v0, %s574_s18 }
  0x12   :  { %50 = vrot.lane.b32.xlu1 %v634_v3, %s575_s0  ;;  %48 = vrot.lane.b32.xlu0 %v620_v1, %s575_s0 }
  0x16   :  { %54 = vrot.lane.b32.xlu1 %v629_v2, %s575_s0  ;;  %52 = vrot.lane.b32.xlu0 %v615_v0, %s575_s0 }
  0x1a   :  { %62 = vrot.lane.b32.xlu1 %v634_v3, %s576_s19  ;;  %60 = vrot.lane.b32.xlu0 %v620_v1, %s576_s19 }
  0x1e   :  { %66 = vrot.lane.b32.xlu1 %v629_v2, %s576_s19  ;;  %64 = vrot.lane.b32.xlu0 %v615_v0, %s576_s19 }
  0x22   :  { %74 = vrot.lane.b32.xlu1 %v634_v3, %s577_s20  ;;  %72 = vrot.lane.b32.xlu0 %v620_v1, %s577_s20 }
  0x26   :  { %78 = vrot.lane.b32.xlu1 %v629_v2, %s577_s20  ;;  %76 = vrot.lane.b32.xlu0 %v615_v0, %s577_s20 }
  0x2a   :  { %86 = vrot.lane.b32.xlu1 %v634_v3, %s578_s21  ;;  %84 = vrot.lane.b32.xlu0 %v620_v1, %s578_s21 }
  0x2e   :  { %90 = vrot.lane.b32.xlu1 %v629_v2, %s578_s21  ;;  %88 = vrot.lane.b32.xlu0 %v615_v0, %s578_s21 }
  0x32   :  { %98 = vrot.lane.b32.xlu1 %v634_v3, %s579_s22  ;;  %96 = vrot.lane.b32.xlu0 %v620_v1, %s579_s22 }
  0x36   :  { %102 = vrot.lane.b32.xlu1 %v629_v2, %s579_s22  ;;  %100 = vrot.lane.b32.xlu0 %v615_v0, %s579_s22 }
  0x3a   :  { %150 = vperm.xlu1 %517, %v667_v5   ;;  %145 = vperm.xlu0 %516, %v672_v6  }
  0x3e   :  { %155 = vperm.xlu1 %517, %v679_v7   ;;  %160 = vperm.xlu0 %516, %v684_v8  }
  0x42   :  { %518 = vset.pattern.permute.xlu1 %v580_v9  ;;  %519 = vset.pattern.permute.xlu0 %v580_v9 }
  0x43   :  { %164 = vperm.xlu1 %518, %v672_v6   ;;  %168 = vperm.xlu0 %519, %v667_v5  }
  0x47   :  { %172 = vperm.xlu1 %518, %v679_v7   ;;  %520 = vset.pattern.permute.xlu0 %v581_v10 }
  0x48   :  { %180 = vperm.xlu0 %520, %v672_v6  }
  0x4b   :  { %176 = vperm.xlu1 %518, %v684_v8  }
  0x4c   :  { %192 = vperm.xlu0 %520, %v684_v8  }
  0x4f   :  { %521 = vset.pattern.permute.xlu1 %v581_v10 }
  0x50   :  { %184 = vperm.xlu1 %521, %v667_v5   ;;  %523 = vset.pattern.permute.xlu0 %v582_v11 }
  0x51   :  { %200 = vperm.xlu0 %523, %v667_v5  }
  0x54   :  { %188 = vperm.xlu1 %521, %v679_v7  }
  0x55   :  { %524 = vset.pattern.permute.xlu0 %v583_v12 }
  0x56   :  { %212 = vperm.xlu0 %524, %v672_v6  }
  0x58   :  { %522 = vset.pattern.permute.xlu1 %v582_v11 }
  0x59   :  { %196 = vperm.xlu1 %522, %v672_v6  }
  0x5a   :  { %224 = vperm.xlu0 %524, %v684_v8  }
  0x5d   :  { %204 = vperm.xlu1 %522, %v679_v7  }
  0x5e   :  { %527 = vset.pattern.permute.xlu0 %v584_v13 }
  0x5f   :  { %232 = vperm.xlu0 %527, %v667_v5  }
  0x61   :  { %208 = vperm.xlu1 %522, %v684_v8  }
  0x63   :  { %528 = vset.pattern.permute.xlu0 %v585_v14 }
  0x64   :  { %244 = vperm.xlu0 %528, %v672_v6  }
  0x65   :  { %525 = vset.pattern.permute.xlu1 %v583_v12 }
  0x66   :  { %216 = vperm.xlu1 %525, %v667_v5  }
  0x68   :  { %256 = vperm.xlu0 %528, %v684_v8  }
  0x6a   :  { %220 = vperm.xlu1 %525, %v679_v7  }
  0x6c   :  { %531 = vset.pattern.permute.xlu0 %v586_v15 }
  0x6d   :  { %264 = vperm.xlu0 %531, %v667_v5  }
  0x6e   :  { %526 = vset.pattern.permute.xlu1 %v584_v13 }
  0x6f   :  { %228 = vperm.xlu1 %526, %v672_v6  }
  0x71   :  { %532 = vset.pattern.permute.xlu0 %v587_v16 }
  0x72   :  { %312 = vperm.xlu0 %532, %v672_v6  }
  0x73   :  { %236 = vperm.xlu1 %526, %v679_v7  }
  0x74   :  { %v711_v17 = vpop.permute.xlu1 %28  ;;  %v25_v18 = vpop.permute.xlu0 %24 }
  0x75   :  { %v109_v37 = vsel %vm108_vm0, %v620_v1, %v25_v18  ;;  %v111_v57 = vsel %vm108_vm0, %v615_v0, %v711_v17 }
  0x76   :  { %324 = vperm.xlu0 %532, %v684_v8  }
  0x77   :  { %240 = vperm.xlu1 %526, %v684_v8  }
  0x78   :  { %v715_v19 = vpop.permute.xlu1 %30  ;;  %v27_v20 = vpop.permute.xlu0 %26 }
  0x79   :  { %v110_v49 = vsel %vm108_vm0, %v634_v3, %v27_v20  ;;  %v112_v58 = vsel %vm108_vm0, %v629_v2, %v715_v19  ;;  %v594_v3 = vmov 15  }
  0x7a   :  { %535 = vset.pattern.permute.xlu0 %v588_v21 }
  0x7b   :  { %529 = vset.pattern.permute.xlu1 %v585_v14  ;;  %332 = vperm.xlu0 %535, %v667_v5  }
  0x7c   :  { %248 = vperm.xlu1 %529, %v667_v5   ;;  %v39_v22 = vpop.permute.xlu1 %38  ;;  %v37_v23 = vpop.permute.xlu0 %36 }
  0x7d   :  { %v114_v40 = vsel %vm113_vm1, %v109_v37, %v37_v23  ;;  %v115_v51 = vsel %vm113_vm1, %v110_v49, %v39_v22 }
  0x7f   :  { %536 = vset.pattern.permute.xlu0 %v589_v24 }
  0x80   :  { %252 = vperm.xlu1 %529, %v679_v7   ;;  %v721_v25 = vpop.permute.xlu1 %42  ;;  %v723_v26 = vpop.permute.xlu0 %40  ;;  %344 = vperm.xlu0 %536, %v672_v6  }
  0x81   :  { %v117_v60 = vsel %vm113_vm1, %v112_v58, %v721_v25  ;;  %v116_v61 = vsel %vm113_vm1, %v111_v57, %v723_v26 }
  0x84   :  { %530 = vset.pattern.permute.xlu1 %v586_v15  ;;  %v51_v27 = vpop.permute.xlu1 %50  ;;  %v49_v28 = vpop.permute.xlu0 %48  ;;  %356 = vperm.xlu0 %536, %v684_v8  }
  0x85   :  { %260 = vperm.xlu1 %530, %v672_v6   ;;  %v119_v44 = vsel %vm118_vm2, %v114_v40, %v49_v28  ;;  %v120_v54 = vsel %vm118_vm2, %v115_v51, %v51_v27 }
  0x88   :  { %v728_v29 = vpop.permute.xlu1 %54  ;;  %v730_v30 = vpop.permute.xlu0 %52  ;;  %539 = vset.pattern.permute.xlu0 %v590_v31 }
  0x89   :  { %268 = vperm.xlu1 %530, %v679_v7   ;;  %364 = vperm.xlu0 %539, %v667_v5   ;;  %v122_v0 = vsel %vm118_vm2, %v117_v60, %v728_v29  ;;  %v121_v2 = vsel %vm118_vm2, %v116_v61, %v730_v30 }
  0x8c   :  { %v63_v32 = vpop.permute.xlu1 %62  ;;  %v61_v33 = vpop.permute.xlu0 %60 }
  0x8d   :  { %272 = vperm.xlu1 %530, %v684_v8   ;;  %540 = vset.pattern.permute.xlu0 %v591_v34  ;;  %v124_v46 = vsel %vm123_vm3, %v119_v44, %v61_v33  ;;  %v125_v55 = vsel %vm123_vm3, %v120_v54, %v63_v32 }
  0x8e   :  { %376 = vperm.xlu0 %540, %v672_v6  }
  0x90   :  { %v67_v35 = vpop.permute.xlu1 %66  ;;  %v65_v36 = vpop.permute.xlu0 %64 }
  0x91   :  { %533 = vset.pattern.permute.xlu1 %v587_v16  ;;  %v127_v10 = vsel %vm123_vm3, %v122_v0, %v67_v35  ;;  %v126_v11 = vsel %vm123_vm3, %v121_v2, %v65_v36 }
  0x92   :  { %316 = vperm.xlu1 %533, %v667_v5   ;;  %388 = vperm.xlu0 %540, %v684_v8  }
  0x94   :  { %v75_v38 = vpop.permute.xlu1 %74  ;;  %v73_v39 = vpop.permute.xlu0 %72 }
  0x95   :  { %v129_v50 = vsel %vm128_vm4, %v124_v46, %v73_v39  ;;  %v130_v59 = vsel %vm128_vm4, %v125_v55, %v75_v38 }
  0x96   :  { %320 = vperm.xlu1 %533, %v679_v7   ;;  %543 = vset.pattern.permute.xlu0 %v592_v41 }
  0x97   :  { %396 = vperm.xlu0 %543, %v667_v5  }
  0x98   :  { %v79_v42 = vpop.permute.xlu1 %78  ;;  %v77_v43 = vpop.permute.xlu0 %76 }
  0x99   :  { %v132_v12 = vsel %vm128_vm4, %v127_v10, %v79_v42  ;;  %v131_v13 = vsel %vm128_vm4, %v126_v11, %v77_v43 }
  0x9a   :  { %534 = vset.pattern.permute.xlu1 %v588_v21 }
  0x9b   :  { %328 = vperm.xlu1 %534, %v672_v6   ;;  %544 = vset.pattern.permute.xlu0 %v593_v45 }
  0x9c   :  { %v87_v47 = vpop.permute.xlu1 %86  ;;  %v85_v48 = vpop.permute.xlu0 %84  ;;  %408 = vperm.xlu0 %544, %v672_v6  }
  0x9d   :  { %v134_v56 = vsel %vm133_vm5, %v129_v50, %v85_v48  ;;  %v135_v62 = vsel %vm133_vm5, %v130_v59, %v87_v47 }
  0x9f   :  { %336 = vperm.xlu1 %534, %v679_v7  }
  0xa0   :  { %v91_v52 = vpop.permute.xlu1 %90  ;;  %v89_v53 = vpop.permute.xlu0 %88  ;;  %420 = vperm.xlu0 %544, %v684_v8  }
  0xa1   :  { %v137_v14 = vsel %vm133_vm5, %v132_v12, %v91_v52  ;;  %v136_v15 = vsel %vm133_vm5, %v131_v13, %v89_v53 }
  0xa3   :  { %340 = vperm.xlu1 %534, %v684_v8  }
  0xa4   :  { %v99_v63 = vpop.permute.xlu1 %98  ;;  %v97_v1 = vpop.permute.xlu0 %96  ;;  %547 = vset.pattern.permute.xlu0 %v594_v3 }
  0xa5   :  { %v140_v4 = vsel %vm138_vm6, %v135_v62, %v99_v63  ;;  %v139_v9 = vsel %vm138_vm6, %v134_v56, %v97_v1  ;;  %428 = vperm.xlu0 %547, %v667_v5  }
  0xa6   :  { %304 = vst [vmem:[#allocation2 + $0x10] sm:$0xff] %v140_v4  ;;  %468 = vst [vmem:[#allocation2 + $0x18] sm:$0xff] %v140_v4 }
  0xa7   :  { %303 = vst [vmem:[#allocation2] sm:$0xff] %v139_v9  ;;  %467 = vst [vmem:[#allocation2 + $0x8] sm:$0xff] %v139_v9  ;;  %537 = vset.pattern.permute.xlu1 %v589_v24 }
  0xa8   :  { %348 = vperm.xlu1 %537, %v667_v5   ;;  %v103_v16 = vpop.permute.xlu1 %102  ;;  %v101_v17 = vpop.permute.xlu0 %100 }
  0xa9   :  { %v142_v18 = vsel %vm138_vm6, %v137_v14, %v103_v16  ;;  %v141_v19 = vsel %vm138_vm6, %v136_v15, %v101_v17 }
  0xaa   :  { %306 = vst [vmem:[#allocation2 + $0x30] sm:$0xff] %v142_v18  ;;  %470 = vst [vmem:[#allocation2 + $0x38] sm:$0xff] %v142_v18 }
  0xab   :  { %305 = vst [vmem:[#allocation2 + $0x20] sm:$0xff] %v141_v19  ;;  %469 = vst [vmem:[#allocation2 + $0x28] sm:$0xff] %v141_v19 }
  0xac   :  { %352 = vperm.xlu1 %537, %v679_v7  }
  0xb0   :  { %538 = vset.pattern.permute.xlu1 %v590_v31 }
  0xb1   :  { %360 = vperm.xlu1 %538, %v672_v6  }
  0xb5   :  { %368 = vperm.xlu1 %538, %v679_v7  }
  0xb9   :  { %372 = vperm.xlu1 %538, %v684_v8   ;;  %v151_v20 = vpop.permute.xlu1 %150  ;;  %v146_v22 = vpop.permute.xlu0 %145 }
  0xbd   :  { %541 = vset.pattern.permute.xlu1 %v591_v34  ;;  %v156_v21 = vpop.permute.xlu1 %155  ;;  %v161_v24 = vpop.permute.xlu0 %160 }
  0xbe   :  { %380 = vperm.xlu1 %541, %v667_v5  }
  0xc2   :  { %384 = vperm.xlu1 %541, %v679_v7   ;;  %v165_v23 = vpop.permute.xlu1 %164  ;;  %v169_v27 = vpop.permute.xlu0 %168 }
  0xc3   :  { %v276_v43 = vsel %vm108_vm0, %v151_v20, %v169_v27 }
  0xc6   :  { %542 = vset.pattern.permute.xlu1 %v592_v41  ;;  %v173_v25 = vpop.permute.xlu1 %172 }
  0xc7   :  { %392 = vperm.xlu1 %542, %v672_v6   ;;  %v181_v29 = vpop.permute.xlu0 %180  ;;  %v277_v58 = vsel %vm108_vm0, %v156_v21, %v173_v25 }
  0xca   :  { %v177_v26 = vpop.permute.xlu1 %176 }
  0xcb   :  { %400 = vperm.xlu1 %542, %v679_v7   ;;  %v193_v31 = vpop.permute.xlu0 %192  ;;  %v278_v56 = vsel %vm108_vm0, %v161_v24, %v177_v26 }
  0xcc   :  { %v282_v59 = vsel %vm113_vm1, %v278_v56, %v193_v31 }
  0xcf   :  { %404 = vperm.xlu1 %542, %v684_v8   ;;  %v185_v28 = vpop.permute.xlu1 %184 }
  0xd0   :  { %v201_v34 = vpop.permute.xlu0 %200  ;;  %v280_v44 = vsel %vm113_vm1, %v276_v43, %v185_v28 }
  0xd1   :  { %v284_v46 = vsel %vm118_vm2, %v280_v44, %v201_v34 }
  0xd3   :  { %545 = vset.pattern.permute.xlu1 %v593_v45  ;;  %v189_v30 = vpop.permute.xlu1 %188 }
  0xd4   :  { %412 = vperm.xlu1 %545, %v667_v5   ;;  %v281_v60 = vsel %vm113_vm1, %v277_v58, %v189_v30 }
  0xd5   :  { %v213_v36 = vpop.permute.xlu0 %212 }
  0xd8   :  { %416 = vperm.xlu1 %545, %v679_v7   ;;  %v197_v32 = vpop.permute.xlu1 %196 }
  0xd9   :  { %v225_v38 = vpop.permute.xlu0 %224 }
  0xdc   :  { %546 = vset.pattern.permute.xlu1 %v594_v3  ;;  %v205_v33 = vpop.permute.xlu1 %204 }
  0xdd   :  { %424 = vperm.xlu1 %546, %v672_v6   ;;  %v285_v63 = vsel %vm118_vm2, %v281_v60, %v205_v33 }
  0xde   :  { %v233_v40 = vpop.permute.xlu0 %232 }
  0xe0   :  { %v209_v35 = vpop.permute.xlu1 %208 }
  0xe1   :  { %432 = vperm.xlu1 %546, %v679_v7   ;;  %v286_v1 = vsel %vm118_vm2, %v282_v59, %v209_v35 }
  0xe2   :  { %v290_v4 = vsel %vm123_vm3, %v286_v1, %v225_v38 }
  0xe3   :  { %v245_v41 = vpop.permute.xlu0 %244 }
  0xe5   :  { %436 = vperm.xlu1 %546, %v684_v8   ;;  %v217_v37 = vpop.permute.xlu1 %216  ;;  %v275_v8 = vsel %vm108_vm0, %v146_v22, %v165_v23 }
  0xe6   :  { %v288_v7 = vsel %vm123_vm3, %v284_v46, %v217_v37  ;;  %v279_v50 = vsel %vm113_vm1, %v275_v8, %v181_v29 }
  0xe7   :  { %v257_v45 = vpop.permute.xlu0 %256  ;;  %v292_v48 = vsel %vm128_vm4, %v288_v7, %v233_v40  ;;  %v283_v52 = vsel %vm118_vm2, %v279_v50, %v197_v32 }
  0xe8   :  { %v287_v55 = vsel %vm123_vm3, %v283_v52, %v213_v36 }
  0xe9   :  { %v221_v39 = vpop.permute.xlu1 %220 }
  0xea   :  { %v289_v0 = vsel %vm123_vm3, %v285_v63, %v221_v39 }
  0xec   :  { %v265_v47 = vpop.permute.xlu0 %264 }
  0xee   :  { %v229_v5 = vpop.permute.xlu1 %228 }
  0xef   :  { %v291_v57 = vsel %vm128_vm4, %v287_v55, %v229_v5 }
  0xf0   :  { %v295_v61 = vsel %vm133_vm5, %v291_v57, %v245_v41 }
  0xf1   :  { %v313_v19 = vpop.permute.xlu0 %312 }
  0xf2   :  { %v237_v42 = vpop.permute.xlu1 %236 }
  0xf3   :  { %v293_v2 = vsel %vm128_vm4, %v289_v0, %v237_v42 }
  0xf5   :  { %v325_v21 = vpop.permute.xlu0 %324 }
  0xf6   :  { %v241_v6 = vpop.permute.xlu1 %240 }
  0xf7   :  { %v294_v11 = vsel %vm128_vm4, %v290_v4, %v241_v6 }
  0xf8   :  { %v298_v13 = vsel %vm133_vm5, %v294_v11, %v257_v45 }
  0xfa   :  { %v333_v24 = vpop.permute.xlu0 %332 }
  0xfb   :  { %v249_v49 = vpop.permute.xlu1 %248 }
  0xfc   :  { %v296_v51 = vsel %vm133_vm5, %v292_v48, %v249_v49 }
  0xfd   :  { %v300_v53 = vsel %vm138_vm6, %v296_v51, %v265_v47 }
  0xfe   :  { %308 = vst [vmem:[#allocation2 + $0x50] sm:$0xff] %v300_v53 }
  0xff   :  { %v253_v54 = vpop.permute.xlu1 %252  ;;  %v345_v26 = vpop.permute.xlu0 %344 }
 0x100   :  { %v297_v9 = vsel %vm133_vm5, %v293_v2, %v253_v54 }
 0x103   :  { %v357_v27 = vpop.permute.xlu0 %356 }
 0x104   :  { %v261_v62 = vpop.permute.xlu1 %260 }
 0x105   :  { %v299_v3 = vsel %vm138_vm6, %v295_v61, %v261_v62 }
 0x106   :  { %307 = vst [vmem:[#allocation2 + $0x40] sm:$0xff] %v299_v3 }
 0x108   :  { %v269_v10 = vpop.permute.xlu1 %268  ;;  %v365_v30 = vpop.permute.xlu0 %364 }
 0x109   :  { %v301_v12 = vsel %vm138_vm6, %v297_v9, %v269_v10 }
 0x10a   :  { %309 = vst [vmem:[#allocation2 + $0x60] sm:$0xff] %v301_v12 }
 0x10c   :  { %v273_v14 = vpop.permute.xlu1 %272 }
 0x10d   :  { %v302_v15 = vsel %vm138_vm6, %v298_v13, %v273_v14  ;;  %v377_v32 = vpop.permute.xlu0 %376 }
 0x10e   :  { %310 = vst [vmem:[#allocation2 + $0x70] sm:$0xff] %v302_v15 }
 0x111   :  { %v317_v16 = vpop.permute.xlu1 %316  ;;  %v389_v34 = vpop.permute.xlu0 %388 }
 0x112   :  { %v440_v40 = vsel %vm108_vm0, %v317_v16, %v333_v24 }
 0x115   :  { %v321_v17 = vpop.permute.xlu1 %320 }
 0x116   :  { %v397_v36 = vpop.permute.xlu0 %396 }
 0x11a   :  { %v329_v18 = vpop.permute.xlu1 %328 }
 0x11b   :  { %v409_v38 = vpop.permute.xlu0 %408  ;;  %v439_v45 = vsel %vm108_vm0, %v313_v19, %v329_v18 }
 0x11c   :  { %v443_v47 = vsel %vm113_vm1, %v439_v45, %v345_v26 }
 0x11e   :  { %v337_v20 = vpop.permute.xlu1 %336 }
 0x11f   :  { %v421_v41 = vpop.permute.xlu0 %420  ;;  %v441_v54 = vsel %vm108_vm0, %v321_v17, %v337_v20 }
 0x122   :  { %v341_v22 = vpop.permute.xlu1 %340 }
 0x123   :  { %v442_v52 = vsel %vm108_vm0, %v325_v21, %v341_v22 }
 0x124   :  { %v429_v6 = vpop.permute.xlu0 %428  ;;  %v446_v55 = vsel %vm113_vm1, %v442_v52, %v357_v27 }
 0x127   :  { %v349_v23 = vpop.permute.xlu1 %348 }
 0x128   :  { %v444_v5 = vsel %vm113_vm1, %v440_v40, %v349_v23 }
 0x129   :  { %v448_v43 = vsel %vm118_vm2, %v444_v5, %v365_v30 }
 0x12b   :  { %v353_v25 = vpop.permute.xlu1 %352 }
 0x12c   :  { %v445_v56 = vsel %vm113_vm1, %v441_v54, %v353_v25 }
 0x130   :  { %v361_v28 = vpop.permute.xlu1 %360 }
 0x131   :  { %v447_v48 = vsel %vm118_vm2, %v443_v47, %v361_v28 }
 0x132   :  { %v451_v51 = vsel %vm123_vm3, %v447_v48, %v377_v32 }
 0x134   :  { %v369_v29 = vpop.permute.xlu1 %368 }
 0x135   :  { %v449_v59 = vsel %vm118_vm2, %v445_v56, %v369_v29 }
 0x138   :  { %v373_v31 = vpop.permute.xlu1 %372 }
 0x139   :  { %v450_v60 = vsel %vm118_vm2, %v446_v55, %v373_v31 }
 0x13a   :  { %v454_v1 = vsel %vm123_vm3, %v450_v60, %v389_v34 }
 0x13d   :  { %v381_v33 = vpop.permute.xlu1 %380 }
 0x13e   :  { %v452_v44 = vsel %vm123_vm3, %v448_v43, %v381_v33 }
 0x13f   :  { %v456_v46 = vsel %vm128_vm4, %v452_v44, %v397_v36 }
 0x141   :  { %v385_v35 = vpop.permute.xlu1 %384 }
 0x142   :  { %v453_v62 = vsel %vm123_vm3, %v449_v59, %v385_v35 }
 0x146   :  { %v393_v37 = vpop.permute.xlu1 %392 }
 0x147   :  { %v455_v53 = vsel %vm128_vm4, %v451_v51, %v393_v37 }
 0x148   :  { %v459_v57 = vsel %vm133_vm5, %v455_v53, %v409_v38 }
 0x14a   :  { %v401_v39 = vpop.permute.xlu1 %400 }
 0x14b   :  { %v457_v63 = vsel %vm128_vm4, %v453_v62, %v401_v39 }
 0x14e   :  { %v405_v42 = vpop.permute.xlu1 %404 }
 0x14f   :  { %v458_v2 = vsel %vm128_vm4, %v454_v1, %v405_v42 }
 0x150   :  { %v462_v9 = vsel %vm133_vm5, %v458_v2, %v421_v41 }
 0x153   :  { %v413_v7 = vpop.permute.xlu1 %412 }
 0x154   :  { %v460_v8 = vsel %vm133_vm5, %v456_v46, %v413_v7 }
 0x155   :  { %v464_v49 = vsel %vm138_vm6, %v460_v8, %v429_v6 }
 0x156   :  { %472 = vst [vmem:[#allocation2 + $0x58] sm:$0xff] %v464_v49 }
 0x157   :  { %v417_v50 = vpop.permute.xlu1 %416 }
 0x158   :  { %v461_v3 = vsel %vm133_vm5, %v457_v63, %v417_v50 }
 0x15c   :  { %v425_v58 = vpop.permute.xlu1 %424 }
 0x15d   :  { %v463_v61 = vsel %vm138_vm6, %v459_v57, %v425_v58 }
 0x15e   :  { %471 = vst [vmem:[#allocation2 + $0x48] sm:$0xff] %v463_v61 }
 0x160   :  { %v433_v0 = vpop.permute.xlu1 %432 }
 0x161   :  { %v465_v4 = vsel %vm138_vm6, %v461_v3, %v433_v0 }
 0x162   :  { %473 = vst [vmem:[#allocation2 + $0x68] sm:$0xff] %v465_v4 }
 0x164   :  { %v437_v10 = vpop.permute.xlu1 %436 }
 0x165   :  { %v466_v11 = vsel %vm138_vm6, %v462_v9, %v437_v10 }
 0x166   :  { %474 = vst [vmem:[#allocation2 + $0x78] sm:$0xff] %v466_v11 }
 0x167   :  { %559 = shalt.err (!%p556_p4)
}
 0x168   :  { %s560_s7 = scalar_lea.hbm %s879_s2, 2048 }
 0x169   :  { %p561_p5 = scmp.ne.s32.totalorder %s879_s2, %s560_s7  ;;  %p564_p6 = scmp.lt.u32.totalorder %s560_s7, %s879_s2 }
 0x16b   :  { %p566_p7 = pnand %p564_p6, %p561_p5 }
 0x16d   :  { %569 = shalt.err (!%p566_p7)
}
 0x16e   :  { %s596_s12 = smov 256  }
 0x16f   :  { %486 = dma.vmem_to_hbm [thread:$0]  %s481_s3, 2048, %s879_s2, [#allocation3], %s596_s12, %s596_s12, %s572_s13  }
 0x170   :  { %570 = dma.done.wait [#allocation3], 2048  }
 0x171   :  { %571 = vsyncadd [#allocation3], 4294965248 }
 0x172   :  { %490 = vsyncpa [#allocation3], 1 }

</bundles_post_ra>
